<compile_context>
chip_gen: v5e
topology: v5e:2x2
jax: 0.10.0
libtpu: 0.0.40
codegen_flags: <defaults>
</compile_context>

<pallas_src>
import jax
import jax.numpy as jnp
from jax import lax
from jax.experimental import pallas as pl
from jax.experimental.pallas import tpu as pltpu
import numpy as np


# --------------------------------------------------------------------------
# One-time (hoisted) parameter packing.  PyTorch layout in, packed layout out.
# --------------------------------------------------------------------------
def pack_gru_params(weight_ih, weight_hh, bias_ih, bias_hh, param_dtype=jnp.float32):
    """weight_ih: (3H, D), weight_hh: (3H, H), bias_*: (3H,)  (PyTorch GRUCell).

    Returns a dict of packed, lane-dense parameters:
      wx    : (D,   4H)  columns = [W_ir.T | W_iz.T | W_in.T |   0   ]
      wh    : (H,   4H)  columns = [W_hr.T | W_hz.T |   0    | W_hn.T]
      w_cat : (D+H, 4H)  rows    = [wx ; wh]   (single-matmul cell path)
      b     : (1,   4H)  =        [b_ir+b_hr | b_iz+b_hz | b_in | b_hn]  (f32)

    param_dtype=jnp.bfloat16 halves weight DMA bytes and feeds the bf16 MXU
    path directly (note: this quantizes the weights; results will differ from
    an f32 reference at ~bf16 precision — expected, not a bug).
    """
    weight_ih = jnp.asarray(weight_ih, jnp.float32)
    weight_hh = jnp.asarray(weight_hh, jnp.float32)
    bias_ih = jnp.asarray(bias_ih, jnp.float32)
    bias_hh = jnp.asarray(bias_hh, jnp.float32)
    H = weight_hh.shape[1]
    D = weight_ih.shape[1]

    w_ir, w_iz, w_in = weight_ih[0:H], weight_ih[H:2 * H], weight_ih[2 * H:3 * H]
    w_hr, w_hz, w_hn = weight_hh[0:H], weight_hh[H:2 * H], weight_hh[2 * H:3 * H]
    b_ir, b_iz, b_in = bias_ih[0:H], bias_ih[H:2 * H], bias_ih[2 * H:3 * H]
    b_hr, b_hz, b_hn = bias_hh[0:H], bias_hh[H:2 * H], bias_hh[2 * H:3 * H]

    wx = jnp.concatenate(
        [w_ir.T, w_iz.T, w_in.T, jnp.zeros((D, H), jnp.float32)], axis=1)   # (D, 4H)
    wh = jnp.concatenate(
        [w_hr.T, w_hz.T, jnp.zeros((H, H), jnp.float32), w_hn.T], axis=1)   # (H, 4H)
    w_cat = jnp.concatenate([wx, wh], axis=0)                               # (D+H, 4H)
    b = jnp.concatenate(
        [b_ir + b_hr, b_iz + b_hz, b_in, b_hn]).reshape(1, 4 * H)           # (1, 4H)

    return dict(
        wx=wx.astype(param_dtype),
        wh=wh.astype(param_dtype),
        w_cat=w_cat.astype(param_dtype),
        b=b,                      # bias stays f32 (added to the f32 accumulator)
    )


def _default_batch_block(B):
    # v7x has 2 TensorCores: give the "parallel" batch axis >= 2 programs when
    # the batch allows it.  No effect on v5e/v6e (1 TC per chip).
    if B >= 16 and B % 2 == 0 and (B // 2) % 8 == 0:
        return B // 2
    return B


# --------------------------------------------------------------------------
# Kernel bodies.
# --------------------------------------------------------------------------
def _gru_gate_math(acc, h, H):
    """acc: (B, 4H) f32 pre-activations [r | z | n_x | n_h]; h: (B, H) f32."""
    rz = jax.nn.sigmoid(acc[:, 0:2 * H])          # one EUP slab for r and z
    r = rz[:, 0:H]
    z = rz[:, H:2 * H]
    n = jnp.tanh(acc[:, 2 * H:3 * H] + r * acc[:, 3 * H:4 * H])
    return (1.0 - z) * n + z * h


def _gru_cell_kernel(x_ref, h_ref, w_ref, b_ref, out_ref):
    """Single step: one fused [x|h] @ w_cat matmul + gate math."""
    H = h_ref.shape[-1]
    h32 = h_ref[...].astype(jnp.float32)
    xh = jnp.concatenate([x_ref[...], h_ref[...]], axis=-1)      # (B, D+H)
    if xh.dtype != w_ref.dtype:           # bf16 weights: feed the MXU bf16 directly
        xh = xh.astype(w_ref.dtype)
    acc = jnp.dot(xh, w_ref[...], preferred_element_type=jnp.float32) + b_ref[...]
    out_ref[...] = _gru_gate_math(acc, h32, H).astype(out_ref.dtype)


def _make_gru_seq_kernel(Tc, Bb, H, return_all):
    """Fused-chunk sequence kernel: Tc timesteps per grid step."""

    def kernel(x_ref, h0_ref, wx_ref, wh_ref, b_ref, out_ref, h_scr, gi_scr):
        t_chunk = pl.program_id(1)

        @pl.when(t_chunk == 0)
        def _():
            h_scr[...] = h0_ref[...].astype(jnp.float32)

        # ---- hoisted input projection: ONE (Tc*Bb, D) matmul per chunk ----
        D = x_ref.shape[-1]
        x_flat = x_ref[...].reshape(Tc * Bb, D)
        if x_flat.dtype != wx_ref.dtype:
            x_flat = x_flat.astype(wx_ref.dtype)
        gi_scr[...] = (jnp.dot(x_flat, wx_ref[...],
                               preferred_element_type=jnp.float32)
                       + b_ref[...])                              # (Tc*Bb, 4H) f32

        wh = wh_ref[...]          # VMEM-resident weights, loaded once per chunk

        # ---- serial recurrence: only the small h-matmul + gate math ----
        def step(t, carry):
            h = h_scr[...]
            h_mm = h if wh.dtype == jnp.float32 else h.astype(wh.dtype)
            off = pl.multiple_of(t * Bb, Bb)
            acc = gi_scr[pl.ds(off, Bb), :] + jnp.dot(
                h_mm, wh, preferred_element_type=jnp.float32)
            h_new = _gru_gate_math(acc, h, H)
            h_scr[...] = h_new
            if return_all:
                out_ref[t] = h_new.astype(out_ref.dtype)
            return carry

        lax.fori_loop(0, Tc, step, 0, unroll=True)

        if not return_all:
            @pl.when(t_chunk == pl.num_programs(1) - 1)
            def _():
                out_ref[...] = h_scr[...].astype(out_ref.dtype)

    return kernel


# --------------------------------------------------------------------------
# Wrappers.
# --------------------------------------------------------------------------
def feature_encoder_gru(x, h, params, use_dropout=False, block_b=None):
    """Single-step GRUCell forward (== FeatureEncoderGRU.forward).

    x: (B, D), h: (B, H); params from pack_gru_params.  Returns (B, H).
    """
    if use_dropout:
        # TODO(synk): in-kernel dropout (pltpu.prng_seed / prng_random_bits)
        # not implemented; module default is use_dropout=False.
        raise NotImplementedError("use_dropout=True not supported in Pallas kernel")
    assert x.dtype == h.dtype, "x and h must share a dtype"
    B, D = x.shape
    H = h.shape[-1]
    w_cat, b = params["w_cat"], params["b"]
    assert w_cat.shape == (D + H, 4 * H) and b.shape == (1, 4 * H)

    tb = _default_batch_block(B) if block_b is None else block_b
    assert B % tb == 0, "B must be divisible by block_b (no partial blocks)"
    grid = (B // tb,)

    return pl.pallas_call(
        _gru_cell_kernel,
        out_shape=jax.ShapeDtypeStruct((B, H), x.dtype),
        grid=grid,
        in_specs=[
            pl.BlockSpec((tb, D), lambda i: (i, 0)),
            pl.BlockSpec((tb, H), lambda i: (i, 0)),
            pl.BlockSpec((D + H, 4 * H), lambda i: (0, 0)),   # resident weights
            pl.BlockSpec((1, 4 * H), lambda i: (0, 0)),
        ],
        out_specs=pl.BlockSpec((tb, H), lambda i: (i, 0)),
        compiler_params=pltpu.CompilerParams(dimension_semantics=("parallel",)),
    )(x, h, w_cat, b)


def feature_encoder_gru_sequence(xs, h0, params, block_t=None, block_b=None,
                                 return_all=True):
    """Fused multi-step GRU: Tc timesteps per grid step, h carried in VMEM.

    xs: (T, B, D), h0: (B, H).
    return_all=True  -> (T, B, H) (all hidden states, written per chunk)
    return_all=False -> (B, H)    (final hidden state only, written once)
    """
    T, B, D = xs.shape
    H = h0.shape[-1]
    wx, wh, b = params["wx"], params["wh"], params["b"]
    assert wx.shape == (D, 4 * H) and wh.shape == (H, 4 * H)

    bb = _default_batch_block(B) if block_b is None else block_b
    assert B % bb == 0, "B must be divisible by block_b"

    if block_t is None:
        # Fuse as many timesteps per grid step as fit a modest VMEM budget
        # (sized conservatively for v7x's 64 MiB VMEM incl. double buffering).
        budget_rows = max(1, (8 * 1024 * 1024) // (4 * bb * max(D, 4 * H)))
        tc = T
        while tc > budget_rows or T % tc:
            tc -= 1
    else:
        tc = block_t
    assert T % tc == 0, "T must be divisible by block_t"

    nb, nt = B // bb, T // tc
    kernel = _make_gru_seq_kernel(tc, bb, H, return_all)

    if return_all:
        out_shape = jax.ShapeDtypeStruct((T, B, H), h0.dtype)
        out_spec = pl.BlockSpec((tc, bb, H), lambda bi, ti: (ti, bi, 0))
    else:
        out_shape = jax.ShapeDtypeStruct((B, H), h0.dtype)
        out_spec = pl.BlockSpec((bb, H), lambda bi, ti: (bi, 0))

    return pl.pallas_call(
        kernel,
        out_shape=out_shape,
        grid=(nb, nt),
        in_specs=[
            pl.BlockSpec((tc, bb, D), lambda bi, ti: (ti, bi, 0)),
            pl.BlockSpec((bb, H), lambda bi, ti: (bi, 0)),
            pl.BlockSpec((D, 4 * H), lambda bi, ti: (0, 0)),   # resident weights
            pl.BlockSpec((H, 4 * H), lambda bi, ti: (0, 0)),
            pl.BlockSpec((1, 4 * H), lambda bi, ti: (0, 0)),
        ],
        out_specs=out_spec,
        scratch_shapes=[
            pltpu.VMEM((bb, H), jnp.float32),             # carried hidden state
            pltpu.VMEM((tc * bb, 4 * H), jnp.float32),    # hoisted x-projection
        ],
        # Batch axis may be parallelized (megacore); the time axis must stay
        # "arbitrary" — the recurrence is serial and h_scr carries across it.
        compiler_params=pltpu.CompilerParams(
            dimension_semantics=("parallel", "arbitrary")),
    )(xs, h0, wx, wh, b)


# --------------------------------------------------------------------------
# Pure-JAX reference (PyTorch GRUCell semantics).
# --------------------------------------------------------------------------
def _reference_cell(x, h, weight_ih, weight_hh, bias_ih, bias_hh):
    H = h.shape[-1]
    gi = x @ weight_ih.T + bias_ih
    gh = h @ weight_hh.T + bias_hh
    i_r, i_z, i_n = gi[:, :H], gi[:, H:2 * H], gi[:, 2 * H:]
    h_r, h_z, h_n = gh[:, :H], gh[:, H:2 * H], gh[:, 2 * H:]
    r = jax.nn.sigmoid(i_r + h_r)
    z = jax.nn.sigmoid(i_z + h_z)
    n = jnp.tanh(i_n + r * h_n)
    return (1.0 - z) * n + z * h


if __name__ == "__main__":
    B, input_dim, ngh_dim, T = 16, 16, 32, 6

    key = jax.random.PRNGKey(0)
    k_x, k_h, k_wih, k_whh, k_bih, k_bhh, k_xs = jax.random.split(key, 7)

    x = jax.random.normal(k_x, (B, input_dim), jnp.float32)
    h = jax.random.normal(k_h, (B, ngh_dim), jnp.float32)
    xs = jax.random.normal(k_xs, (T, B, input_dim), jnp.float32)

    bound = 1.0 / np.sqrt(ngh_dim)
    weight_ih = jax.random.uniform(k_wih, (3 * ngh_dim, input_dim), jnp.float32, -bound, bound)
    weight_hh = jax.random.uniform(k_whh, (3 * ngh_dim, ngh_dim), jnp.float32, -bound, bound)
    bias_ih = jax.random.uniform(k_bih, (3 * ngh_dim,), jnp.float32, -bound, bound)
    bias_hh = jax.random.uniform(k_bhh, (3 * ngh_dim,), jnp.float32, -bound, bound)

    # Hoisted out of the hot path: pack once at parameter-load time.
    params = pack_gru_params(weight_ih, weight_hh, bias_ih, bias_hh)
    params = jax.block_until_ready(params)

    # --- single-step (== module forward); B=16 -> two parallel batch blocks ---
    out = feature_encoder_gru(x, h, params)
    out = jax.block_until_ready(out)
    ref = _reference_cell(x, h, weight_ih, weight_hh, bias_ih, bias_hh)
    np.testing.assert_allclose(np.asarray(out), np.asarray(ref), rtol=2e-5, atol=2e-5)

    # --- fused sequence: whole T in one chunk, all hidden states returned ---
    outs_seq = feature_encoder_gru_sequence(xs, h, params, return_all=True)
    outs_seq = jax.block_until_ready(outs_seq)
    h_ref = h
    refs = []
    for t in range(T):
        h_ref = _reference_cell(xs[t], h_ref, weight_ih, weight_hh, bias_ih, bias_hh)
        refs.append(h_ref)
    refs = jnp.stack(refs, axis=0)
    np.testing.assert_allclose(np.asarray(outs_seq), np.asarray(refs), rtol=2e-5, atol=2e-5)

    # --- fused sequence, final-hidden-only output mode ---
    h_last = feature_encoder_gru_sequence(xs, h, params, return_all=False)
    h_last = jax.block_until_ready(h_last)
    np.testing.assert_allclose(np.asarray(h_last), np.asarray(refs[-1]), rtol=2e-5, atol=2e-5)

    print("KERNEL_OK")
</pallas_src>

<mosaic_0001>
module attributes {stable_mosaic.version = 11 : i64} {
  func.func @_gru_cell_kernel(%arg0: i32, %arg1: memref<8x16xf32, #tpu.memory_space<vmem>>, %arg2: memref<8x32xf32, #tpu.memory_space<vmem>>, %arg3: memref<48x128xf32, #tpu.memory_space<vmem>>, %arg4: memref<1x128xf32, #tpu.memory_space<vmem>>, %arg5: memref<8x32xf32, #tpu.memory_space<vmem>>) attributes {dimension_semantics = [#tpu.dimension_semantics<parallel>], iteration_bounds = array<i64: 2>, scalar_prefetch = 0 : i64, scratch_operands = 0 : i64, tpu.core_type = #tpu.core_type<tc>, window_params = [{transform_indices = @transform_0, window_bounds = array<i64: 8, 16>}, {transform_indices = @transform_1, window_bounds = array<i64: 8, 32>}, {pipeline_mode = #tpu.pipeline_mode<synchronous>, transform_indices = @transform_2, window_bounds = array<i64: 48, 128>}, {pipeline_mode = #tpu.pipeline_mode<synchronous>, transform_indices = @transform_3, window_bounds = array<i64: 1, 128>}, {transform_indices = @transform_4, window_bounds = array<i64: 8, 32>}]} {
    %c0 = arith.constant 0 : index
    %c0_0 = arith.constant 0 : index
    %0 = vector.load %arg2[%c0, %c0_0] : memref<8x32xf32, #tpu.memory_space<vmem>>, vector<8x32xf32>
    %c0_1 = arith.constant 0 : index
    %c0_2 = arith.constant 0 : index
    %1 = vector.load %arg1[%c0_1, %c0_2] : memref<8x16xf32, #tpu.memory_space<vmem>>, vector<8x16xf32>
    %c0_3 = arith.constant 0 : index
    %c0_4 = arith.constant 0 : index
    %2 = vector.load %arg2[%c0_3, %c0_4] : memref<8x32xf32, #tpu.memory_space<vmem>>, vector<8x32xf32>
    %3 = tpu.concatenate %1, %2 in 1 : vector<8x16xf32>, vector<8x32xf32> -> vector<8x48xf32>
    %c0_5 = arith.constant 0 : index
    %c0_6 = arith.constant 0 : index
    %4 = vector.load %arg3[%c0_5, %c0_6] : memref<48x128xf32, #tpu.memory_space<vmem>>, vector<48x128xf32>
    %cst = arith.constant dense<0.000000e+00> : vector<8x128xf32>
    %5 = tpu.matmul %3, %4, %cst {dimension_numbers = #tpu.dot_dimension_numbers<[1], [0], [0], [1], [0, 0, 1, 1], [], []>} : vector<8x48xf32>, vector<48x128xf32>, vector<8x128xf32> -> vector<8x128xf32>
    %c0_7 = arith.constant 0 : index
    %c0_8 = arith.constant 0 : index
    %6 = vector.load %arg4[%c0_7, %c0_8] : memref<1x128xf32, #tpu.memory_space<vmem>>, vector<1x128xf32>
    %7 = vector.broadcast %6 : vector<1x128xf32> to vector<8x128xf32>
    %8 = arith.addf %5, %7 : vector<8x128xf32>
    %9 = vector.extract_strided_slice %8 {offsets = [0, 0], sizes = [8, 64], strides = [1, 1]} : vector<8x128xf32> to vector<8x64xf32>
    %10 = arith.negf %9 : vector<8x64xf32>
    %11 = math.exp %10 : vector<8x64xf32>
    %cst_9 = arith.constant 1.000000e+00 : f32
    %12 = vector.broadcast %cst_9 : f32 to vector<8x64xf32>
    %13 = arith.addf %12, %11 : vector<8x64xf32>
    %14 = arith.divf %12, %13 : vector<8x64xf32>
    %15 = vector.extract_strided_slice %14 {offsets = [0, 0], sizes = [8, 32], strides = [1, 1]} : vector<8x64xf32> to vector<8x32xf32>
    %16 = vector.extract_strided_slice %14 {offsets = [0, 32], sizes = [8, 32], strides = [1, 1]} : vector<8x64xf32> to vector<8x32xf32>
    %17 = vector.extract_strided_slice %8 {offsets = [0, 64], sizes = [8, 32], strides = [1, 1]} : vector<8x128xf32> to vector<8x32xf32>
    %18 = vector.extract_strided_slice %8 {offsets = [0, 96], sizes = [8, 32], strides = [1, 1]} : vector<8x128xf32> to vector<8x32xf32>
    %19 = arith.mulf %15, %18 : vector<8x32xf32>
    %20 = arith.addf %17, %19 : vector<8x32xf32>
    %21 = math.tanh %20 : vector<8x32xf32>
    %cst_10 = arith.constant 1.000000e+00 : f32
    %22 = vector.broadcast %cst_10 : f32 to vector<8x32xf32>
    %23 = arith.subf %22, %16 : vector<8x32xf32>
    %24 = arith.mulf %23, %21 : vector<8x32xf32>
    %25 = arith.mulf %16, %0 : vector<8x32xf32>
    %26 = arith.addf %24, %25 : vector<8x32xf32>
    %c0_11 = arith.constant 0 : index
    %c0_12 = arith.constant 0 : index
    %27 = vector.load %arg5[%c0_11, %c0_12] : memref<8x32xf32, #tpu.memory_space<vmem>>, vector<8x32xf32>
    tpu.vector_store %arg5[%c0_11, %c0_12], %26 {strides = array<i32>} : memref<8x32xf32, #tpu.memory_space<vmem>>, vector<8x32xf32>,
    return
  }
  func.func @transform_0(%arg0: i32) -> (i32, i32) {
    %c0_i32 = arith.constant 0 : i32
    %c0_i32_0 = arith.constant 0 : i32
    return %arg0, %c0_i32 : i32, i32
  }
  func.func @transform_1(%arg0: i32) -> (i32, i32) {
    %c0_i32 = arith.constant 0 : i32
    %c0_i32_0 = arith.constant 0 : i32
    return %arg0, %c0_i32 : i32, i32
  }
  func.func @transform_2(%arg0: i32) -> (i32, i32) {
    %c0_i32 = arith.constant 0 : i32
    %c0_i32_0 = arith.constant 0 : i32
    %c0_i32_1 = arith.constant 0 : i32
    return %c0_i32, %c0_i32_0 : i32, i32
  }
  func.func @transform_3(%arg0: i32) -> (i32, i32) {
    %c0_i32 = arith.constant 0 : i32
    %c0_i32_0 = arith.constant 0 : i32
    %c0_i32_1 = arith.constant 0 : i32
    return %c0_i32, %c0_i32_0 : i32, i32
  }
  func.func @transform_4(%arg0: i32) -> (i32, i32) {
    %c0_i32 = arith.constant 0 : i32
    %c0_i32_0 = arith.constant 0 : i32
    return %arg0, %c0_i32 : i32, i32
  }
}

</mosaic_0001>

<bundles_post_ra>
// kernel: tpu_custom_call.1
= control target key start
LH: loop header
LB: loop body
LE: loop exit
PB: predicated region body
PF: predicated region fallthrough
CT: control target
= control target key end

     0   :  { %s942_s0 = inlined_call_operand.hbm [shape: f32[16,16], index: 0, kind: input, shape index: {}]   ;;  %s943_s1 = inlined_call_operand.hbm [shape: f32[16,32], index: 1, kind: input, shape index: {}]   ;;  %s944_s2 = inlined_call_operand.hbm [shape: f32[48,128], index: 2, kind: input, shape index: {}]   ;;  %s945_s3 = inlined_call_operand.vmem [shape: f32[1,128], index: 3, kind: input, shape index: {}]   ;;  %s946_s4 = inlined_call_operand.hbm [shape: f32[16,32], index: 4, kind: output, shape index: {}]  }
   0x1   :  { %948 = sst [smem:[#allocation15_spill]] %s944_s2 }
   0x2   :  { %9 = vsyncpa [#allocation3], 0 }
   0x3   :  { %11 = vsyncpa [#allocation3 + $0x1], 0 }
   0x4   :  { %12 = vsyncpa [#allocation6], 0 }
   0x5   :  { %14 = vsyncpa [#allocation6 + $0x1], 0 }
   0x6   :  { %15 = vsyncpa [#allocation4], 0 }
   0x7   :  { %17 = vsyncpa [#allocation4 + $0x1], 0  ;;  %s769_s15 = smov 0   ;;  %s771_s16 = smov 0  }
   0x8   :  { %s773_s17 = smov 0   ;;  %s775_s18 = smov 0  }
   0x9 LB: > { %949 = sst [smem:[#allocation13_spill]] %s731_s17  ;;  %s793_s22 = sadd.s32 4294967295, %s735_s18   ;;  %s735_s18 = sphi %s775_s18, %s963_s18   ;;  %s731_s17 = sphi %s773_s17, %s960_s17   ;;  %s727_s16 = sphi %s771_s16, %s962_s16   ;;  %s723_s15 = sphi %s769_s15, %s961_s15  }
   0xa   : > { %s950_s2 = sld [smem:[#allocation15_spill]]  ;;  %p478_p0 = scmp.ge.s32.totalorder %s735_s18, 1 }
   0xb   : > { %p44_p1 = scmp.eq.s32.totalorder %s793_s22, 0  ;;  %p148_p2 = scmp.lt.s32.totalorder %s735_s18, 3 }
   0xc   : > { %s737_s24 = smov [#allocation7]   ;;  %s738_s26 = smov 128  }
   0xd   : > { %p798_p3 = pnand %p478_p0, %p148_p2  ;;  %s161_s25 = sshll.u32 %s737_s24, 4  ;;  %s162_s25 = int_to_ptr.vmem [resolvable:$true] %s161_s25 }
   0xe   : > { %s739_s27 = smov 8   ;;  %s477_s28 = sadd.s32 4294967294, %s735_s18  }
   0xf   : > { %p506_p4 = pneg %p798_p3  ;;  %s809_s29 = sadd.s32 1, %s735_s18  }
  0x10   : > { %s159_s21 = sshll.u32 %s950_s2, 4  ;;  %s30_s30 = sadd.s32 1, %s731_s17  ;;  %s160_s21 = int_to_ptr.hbm [resolvable:$true] %s159_s21 }
  0x11   : > { %p507_p6 = pnand %p506_p4, %p44_p1  ;;  %s27_s5 = ssub.s32 %s735_s18, %s809_s29 }
  0x12   : > { %p37_p7 = scmp.ne.s32.totalorder %s731_s17, %s727_s16  ;;  %p28_p8 = scmp.eq.s32.totalorder %s27_s5, 0 }
  0x13   : > { %509 = dma.hbm_to_vmem [thread:$0]  (!%p507_p6), %s160_s21, 768, %s162_s25, [#allocation6], %s738_s26, %s738_s26, %s739_s27  }
  0x14   : > { %p38_p9 = scmp.eq.s32.totalorder %s735_s18, 0  ;;  %p43_p10 = scmp.ne.s32.totalorder %s727_s16, %s723_s15 }
  0x15   : > { %p135_p11 = scmp.eq.s32.totalorder %s793_s22, 1  ;;  %p141_p2 = scmp.eq.s32.totalorder %s477_s28, 1 }
  0x16   : > { %s821_s6 = scalar_select %p28_p8, %s731_s17, %s30_s30  }
  0x17   : > { %p823_p12 = por %p38_p9, %p37_p7  ;;  %p829_p13 = por %p44_p1, %p43_p10 }
  0x18   : > { %952 = sst [smem:[#allocation14_spill]] %s821_s6  ;;  %p833_p0 = por %p135_p11, %p37_p7 }
  0x19   : > { %p522_p4 = scmp.lt.s32.totalorder %s735_s18, 2  ;;  %s178_s10 = sand.u32 1, %s731_s17  }
  0x1a   : > { %p839_p6 = por %p141_p2, %p43_p10  ;;  %s481_s12 = sshll.u32 %s178_s10, 3 }
  0x1b   : > { %s482_s13 = sshll.u32 %s735_s18, 3  ;;  %s182_s24 = scalar_lea.vmem [#allocation2], %s481_s12 }
  0x1c   : > { %s186_s20 = scalar_lea.hbm %s942_s0, %s482_s13  ;;  %s190_s25 = sshll.u32 %s182_s24, 4  ;;  %s191_s25 = int_to_ptr.vmem [resolvable:$true] %s190_s25 }
  0x1d   : > { %s188_s21 = sshll.u32 %s186_s20, 4  ;;  %p849_p7 = pnand %p522_p4, %p823_p12  ;;  %s189_s21 = int_to_ptr.hbm [resolvable:$true] %s188_s21 }
  0x1e   : > { %s205_s30 = scalar_lea.hbm %s943_s1, %s482_s13  ;;  %s197_s5 = sand.u32 1, %s735_s18  }
  0x1f   : > { %s179_s2 = scalar_lea.sflag [#allocation3], %s178_s10  ;;  %s601_s14 = sshra.s32 %s189_s21, 4  ;;  %s602_s14 = int_to_ptr.hbm [resolvable:$true] %s601_s14 }
  0x20   : > { %s603_s19 = scalar_lea.hbm %s602_s14, 8  ;;  %p605_p9 = pneg %p849_p7 }
  0x21   : > { %p604_p8 = scmp.ne.s32.totalorder %s602_s14, %s603_s19  ;;  %s608_s24 = scalar_lea.hbm %s942_s0, 16 }
  0x22   : > { %p609_p12 = scmp.lt.s32.totalorder %s602_s14, %s942_s0  ;;  %p610_p2 = scmp.lt.s32.totalorder %s608_s24, %s603_s19 }
  0x23   : > { %p606_p10 = pnand %p605_p9, %p604_p8 }
  0x24   : > { %p611_p4 = por %p610_p2, %p609_p12 }
  0x25   : > { %p607_p11 = pneg %p606_p10 }
  0x27   : > { %p612_p5 = pnand %p611_p4, %p607_p11 }
  0x29   : > { %615 = shalt.err (!%p612_p5)
}
  0x2a   : > { %513 = dma.hbm_to_vmem [thread:$0]  (!%p849_p7), %s189_s21, 128, %s191_s25, %s179_s2  }
  0x2b   : > { %s207_s10 = sshll.u32 %s205_s30, 4  ;;  %s201_s13 = scalar_lea.vmem [#allocation5], %s481_s12  ;;  %s208_s10 = int_to_ptr.hbm [resolvable:$true] %s207_s10 }
  0x2c   : > { %s209_s6 = sshll.u32 %s201_s13, 4  ;;  %s198_s17 = scalar_lea.sflag [#allocation6], %s197_s5  ;;  %s210_s6 = int_to_ptr.vmem [resolvable:$true] %s209_s6 }
  0x2d   : > { %s631_s7 = sshra.s32 %s208_s10, 4  ;;  %s638_s24 = scalar_lea.hbm %s943_s1, 16  ;;  %s632_s7 = int_to_ptr.hbm [resolvable:$true] %s631_s7 }
  0x2e   : > { %s633_s20 = scalar_lea.hbm %s632_s7, 8  ;;  %p639_p5 = scmp.lt.s32.totalorder %s632_s7, %s943_s1 }
  0x2f   : > { %p634_p8 = scmp.ne.s32.totalorder %s632_s7, %s633_s20  ;;  %p640_p11 = scmp.lt.s32.totalorder %s638_s24, %s633_s20 }
  0x31   : > { %p636_p10 = pnand %p634_p8, %p605_p9  ;;  %p641_p2 = por %p640_p11, %p639_p5 }
  0x33   : > { %p637_p12 = pneg %p636_p10 }
  0x35   : > { %p642_p4 = pnand %p641_p2, %p637_p12 }
  0x37   : > { %645 = shalt.err (!%p642_p4)
}
  0x38   : > { %516 = dma.hbm_to_vmem [thread:$0]  (!%p849_p7), %s208_s10, 128, %s210_s6, %s198_s17  }
  0x39   : > { %218 = sbr.rel (%p798_p3) target bundleno = 767 (0x2ff), region = 36  ;;  %s884_s12 = sand.u32 (!%p798_p3), 1, %s727_s16  }
  0x3a   : > { %s887_s21 = sshll.u32 (!%p798_p3), %s884_s12, 3  ;;  %s221_s25 = scalar_lea.sflag (!%p798_p3), [#allocation3], %s884_s12 }
  0x3b   : > { %s224_s30 = scalar_lea.vmem (!%p798_p3), [#allocation2], %s887_s21 }
  0x3e   : > { %706 = dma.done.wait (%p829_p13), %s221_s25, 128  }
  0x3f   : > { %708 = vsyncadd (%p829_p13), %s221_s25, 4294967168  ;;  %s230_s17 = sand.u32 1, %s793_s22   ;;  %s234_s6 = scalar_lea.vmem [#allocation5], %s887_s21 }
  0x40   : > { %s231_s23 = scalar_lea.sflag [#allocation6], %s230_s17 }
  0x41   : > { %710 = dma.done.wait (%p829_p13), %s231_s23, 128  }
  0x42   : > { %712 = vsyncadd (%p829_p13), %s231_s23, 4294967168 }
  0x43   : > { %714 = dma.done.wait (%p44_p1), [#allocation6], 768  }
  0x44   : > { %716 = vsyncadd (%p44_p1), [#allocation6], 4294966528  ;;  %v270_v0 = vld [vmem:[%s234_s6] sm:$0xff]  ;;  %v283_v1 = vld [vmem:[#allocation7 + $0x28] sm:$0xff]  ;;  %s740_s26 = smov 16   ;;  %s741_s5 = smov 32  }
  0x45   : > { %v282_v2 = vld [vmem:[#allocation7 + $0x20] sm:$0xff]  ;;  %273 = vrot.lane.b32.xlu0 %v270_v0, %s740_s26  ;;  %302 = vmatpush.msra.mxu0 %v283_v1  ;;  %v281_v3 = vld [vmem:[#allocation7 + $0x18] sm:$0xff]  ;;  %v280_v4 = vld [vmem:[#allocation7 + $0x10] sm:$0xff]  ;;  %vm276_vm0 = vcmask 130048   ;;  %vm288_vm1 = vcmask 392192   ;;  %s742_s10 = smov 64  }
  0x46   : > { %348 = vrot.lane.b32.xlu2 %v270_v0, %s741_s5  ;;  %v279_v5 = vld [vmem:[#allocation7 + $0x8] sm:$0xff]  ;;  %v278_v6 = vld [vmem:[#allocation7] sm:$0xff]  ;;  %s743_s13 = smov 96   ;;  %s493_s7 = sshll.u32 %s793_s22, 3  ;;  %vm357_vm6 = vcmask 261120  }
  0x47   : > { %303 = vmatpush.msra.mxu0 %v282_v2  ;;  %v271_v7 = vld [vmem:[%s224_s30] sm:$0xff]  ;;  %s370_s19 = scalar_lea.hbm %s946_s4, %s493_s7  ;;  %s269_s24 = scalar_lea.vmem [#allocation8], %s887_s21 }
  0x48   : > { %v564_v10 = vld [vmem:[%s945_s3] ss:$0 sm:$0xff]  ;;  %s372_s27 = sshll.u32 %s269_s24, 4  ;;  %s374_s2 = sshll.u32 %s370_s19, 4  ;;  %s373_s27 = int_to_ptr.vmem [resolvable:$true] %s372_s27  ;;  %s375_s2 = int_to_ptr.hbm [resolvable:$true] %s374_s2 }
  0x49   : > { %304 = vmatpush.msra.mxu0 %v281_v3  ;;  %s360_s25 = scalar_lea.sflag [#allocation4], %s884_s12  ;;  %s675_s30 = sshra.s32 %s375_s2, 4  ;;  %s676_s30 = int_to_ptr.hbm [resolvable:$true] %s675_s30 }
  0x4a   : > { %s677_s17 = scalar_lea.hbm %s676_s30, 8  ;;  %s681_s6 = scalar_lea.hbm %s946_s4, 16 }
  0x4b   : > { %305 = vmatpush.msra.mxu0 %v280_v4  ;;  %p678_p1 = scmp.ne.s32.totalorder %s676_s30, %s677_s17  ;;  %p682_p7 = scmp.lt.s32.totalorder %s676_s30, %s946_s4 }
  0x4c   : > { %p683_p9 = scmp.lt.s32.totalorder %s681_s6, %s677_s17 }
  0x4d   : > { %306 = vmatpush.msra.mxu0 %v279_v5  ;;  %p679_p3 = pnand %p678_p1, %p833_p0 }
  0x4e   : > { %p684_p8 = por %p683_p9, %p682_p7 }
  0x4f   : > { %307 = vmatpush.msra.mxu0 %v278_v6  ;;  %p680_p13 = pneg %p679_p3 }
  0x51   : > { %p685_p10 = pnand %p684_p8, %p680_p13 }
  0xa0   : > { %v349_v31 = vpop.permute.xlu2 %348 }
  0xb7   : > { %v274_v8 = vpop.permute.xlu0 %273 }
  0xb8   : > { %v277_v9 = vsel %vm276_vm0, %v271_v7, %v274_v8 }
  0xb9   : > { %490 = vmatmul.msk.f32.vlgmr.msra.gmra.mxu0 %vm288_vm1, %v277_v9 }
 0x136   : > { %v309_v11 = vpop.f32.mrf.mxu0 }
 0x137   : > { %v310_v12 = vadd.f32 %v564_v10, %v309_v11 }
 0x139   : > { %332 = vrot.lane.b32.xlu0 %v310_v12, %s741_s5  ;;  %v491_v13 = vmul.f32 -1.442695, %v310_v12 }
 0x13b   : > { %565 = vpow2.f32 %v491_v13 }
 0x141   : > { %v566_v14 = vpop.eup %565 }
 0x142   : > { %v315_v15 = vadd.f32 1.0, %v566_v14 }
 0x144   : > { %567 = vrcp.f32 %v315_v15  ;;  %v327_v21 = vand.u32 2147483648, %v315_v15  ;;  %vm321_vm3 = vweird.f32 %v315_v15  ;;  %v325_v22 = vand.u32 2147483647, %v315_v15 }
 0x146   : > { %v328_v24 = vor.u32 1.1754944e-38, %v327_v21  ;;  %vm326_vm5 = vcmp.eq.f32.partialorder %v325_v22, 8.507059e+37 }
 0x14a   : > { %v568_v16 = vpop.eup %567 }
 0x14b   : > { %v317_v17 = vmul.f32 %v568_v16, %v315_v15  ;;  %vm322_vm2 = vweird.f32 %v568_v16 }
 0x14c   : > { %vm323_vm4 = vmor %vm321_vm3, %vm322_vm2 }
 0x14d   : > { %v318_v18 = vsub.f32 1.0, %v317_v17 }
 0x14f   : > { %v319_v19 = vmul.f32 %v568_v16, %v318_v18 }
 0x151   : > { %v320_v20 = vadd.f32 %v568_v16, %v319_v19 }
 0x153   : > { %v324_v23 = vsel %vm323_vm4, %v568_v16, %v320_v20 }
 0x154   : > { %v329_v25 = vsel %vm326_vm5, %v328_v24, %v324_v23 }
 0x155   : > { %v342_v32 = vsub.f32 1.0, %v329_v25  ;;  %v351_v34 = vmul.f32 %v349_v31, %v329_v25 }
 0x1ab   : > { %v333_v26 = vpop.permute.xlu0 %332 }
 0x1ac   : > { %v335_v27 = vmul.f32 %v333_v26, %v329_v25 }
 0x1ae   : > { %337 = vrot.lane.b32.xlu1 %v335_v27, %s742_s10 }
 0x220   : > { %v338_v28 = vpop.permute.xlu1 %337 }
 0x221   : > { %v340_v29 = vadd.f32 %v338_v28, %v310_v12 }
 0x223   : > { %569 = vtanh.f32 %v340_v29 }
 0x229   : > { %v570_v30 = vpop.eup %569 }
 0x22a   : > { %344 = vrot.lane.b32.xlu1 %v570_v30, %s743_s13 }
 0x29c   : > { %v345_v33 = vpop.permute.xlu1 %344 }
 0x29d   : > { %v347_v35 = vmul.f32 %v345_v33, %v342_v32 }
 0x29f   : > { %v352_v36 = vadd.f32 %v351_v34, %v347_v35 }
 0x2a1   : > { %354 = vrot.lane.b32.xlu2 %v352_v36, %s743_s13 }
 0x2fb   : > { %v355_v37 = vpop.permute.xlu2 %354 }
 0x2fc   : > { %358 = vst.msk [vmem:[%s269_s24] sm:$0xff] %vm357_vm6, %v355_v37 }
 0x2fd   : > { %688 = shalt.err (!%p685_p10)
}
 0x2fe   : > { %504 = dma.vmem_to_hbm [thread:$0]  (%p833_p0), %s373_s27, 128, %s375_s2, %s360_s25  }
 0x2ff PF: > { %s386_s12 = sand.u32 1, %s723_s15   ;;  %p958_p12 = scmp.ge.s32.totalorder %s735_s18, 2 }
 0x300   : > { %s387_s5 = scalar_lea.sflag [#allocation4], %s386_s12 }
 0x301   : > { %p518_p5 = pnand %p958_p12, %p839_p6 }
 0x303   : > { %p519_p11 = pneg %p518_p5 }
 0x305   : > { %718 = dma.done.wait (%p519_p11), %s387_s5, 128  }
 0x306   : > { %720 = vsyncadd (%p519_p11), %s387_s5, 4294967168  ;;  %s959_s8 = sld [smem:[#allocation13_spill]]  ;;  %p20_p2 = scmp.ge.s32.totalorder %s809_s29, 4  }
 0x307   : > { %s960_s17 = sld [smem:[#allocation14_spill]]  ;;  %s961_s15 = smov %s727_s16 }
 0x308   : > { %s963_s18 = smov %s809_s29  ;;  %22 = sbr.rel (!%p20_p2) target bundleno = 9 (0x9), region = 98 }
 0x30c   : > { %s962_s16 = smov %s959_s8 }
 0x30d   :  { %393 = vsyncpa [#allocation3], 1 }
 0x30e   :  { %395 = vsyncpa [#allocation3 + $0x1], 1 }
 0x30f   :  { %396 = vsyncpa [#allocation6], 1 }
 0x310   :  { %398 = vsyncpa [#allocation6 + $0x1], 1 }
 0x311   :  { %399 = vsyncpa [#allocation4], 1 }
 0x312   :  { %401 = vsyncpa [#allocation4 + $0x1], 1 }

</bundles_post_ra>
